<compile_context>
chip_gen: v6e
topology: v6e:2x2x1
jax: 0.10.0
libtpu: 0.0.40
codegen_flags: <defaults>
</compile_context>

<pallas_src>
import jax
import jax.numpy as jnp
from jax import lax
from jax.experimental import pallas as pl
from jax.experimental.pallas import tpu as pltpu


def _sublane_pack(dtype) -> int:
    """Minimum sublane multiple for a packed tile: f32 -> 8, bf16 -> 16, int8 -> 32."""
    itemsize = jnp.dtype(dtype).itemsize
    return (4 // itemsize) * 8


def _pick_row_tile(B, T, E, dtype, *, buffer_budget_bytes=1 << 20) -> int:
    """Rows per grid step over the flattened (B*T, E) output.

    The tile must be a multiple of the sublane packing, must either divide T
    (sub-sequence tile) or be a whole multiple of T dividing B*T (batch
    folding), and a single (rt, E) buffer must stay under the byte budget so
    the double-buffered pos/out/idx blocks fit scoped VMEM on every chip gen.
    """
    itemsize = jnp.dtype(dtype).itemsize
    pack = _sublane_pack(dtype)
    max_rows = max(pack, buffer_budget_bytes // max(1, E * itemsize))

    # Batch-folded candidates (largest first): rt = k*T with k | B.
    if T % pack == 0:
        for k in range(B, 1, -1):
            rt = k * T
            if B % k == 0 and rt <= max_rows:
                return rt
    # Sub-sequence candidates: rt | T and rt a multiple of the packing.
    for rt in range(min(T, max_rows), pack - 1, -1):
        if T % rt == 0 and rt % pack == 0:
            return rt
    # Fallback: one full sequence per step (full-T block is always expressible).
    return T


def combined_input(idx, token_table, position_table, *, buffer_budget_bytes=1 << 20):
    """idx: (B, T) int; token_table: (V, E); position_table: (P, E) with P >= T."""
    B, T = idx.shape
    V, E = token_table.shape
    P, E2 = position_table.shape
    assert E == E2 and T <= P
    dtype = token_table.dtype
    itemsize = jnp.dtype(dtype).itemsize

    table_bytes = V * E * itemsize
    # Resident-table + one-hot gather path is only sensible for small vocabs.
    assert table_bytes <= 16 * 1024 * 1024, (
        "token table too large for the VMEM-resident path; see TODO(synk) above")

    rt = _pick_row_tile(B, T, E, dtype, buffer_budget_bytes=buffer_budget_bytes)
    rows = B * T
    assert rows % rt == 0
    num_tiles = rows // rt
    folded = rt > T                    # one grid step covers rt // T whole sequences
    ps = T if folded else rt           # positional rows consumed per step
    nt = 1 if folded else T // rt      # sequence tiles per sequence

    # Ids as a lane-dim-1 column so the in-kernel one-hot broadcast needs no transpose.
    idx_col = idx.reshape(rows, 1).astype(jnp.int32)

    def kernel(idx_ref, tok_ref, pos_ref, o_ref):
        ids = idx_ref[...]                                             # (rt, 1) int32
        hot = (ids == lax.broadcasted_iota(jnp.int32, (rt, V), 1)).astype(dtype)
        # Exact row gather on the MXU: one-hot (rt, V) @ table (V, E) -> (rt, E).
        gathered = jnp.dot(hot, tok_ref[...], preferred_element_type=jnp.float32)
        pos = pos_ref[...].astype(jnp.float32)                         # (ps, E)
        if folded:
            pos = jnp.broadcast_to(pos[None], (rt // T, T, E)).reshape(rt, E)
        o_ref[...] = (gathered + pos).astype(o_ref.dtype)              # one lane-dense store

    # Token table: constant block index -> resident across the grid. For large
    # tables, single-buffer it (constant index gains nothing from pipelining and
    # this halves its VMEM footprint, which matters most on v7x's 64 MiB VMEM).
    tok_spec_kwargs = {}
    if table_bytes >= 4 * 1024 * 1024:
        tok_spec_kwargs["pipeline_mode"] = pl.Buffered(1)
    tok_spec = pl.BlockSpec((V, E), lambda i: (0, 0), **tok_spec_kwargs)

    pos_index = (lambda i: (0, 0)) if folded else (lambda i: (i % nt, 0))

    # Explicit VMEM budget: resident table (+ double buffer unless Buffered(1))
    # + double-buffered idx/pos/out blocks + in-kernel one-hot/accumulator + slack.
    tok_vmem = table_bytes * (1 if tok_spec_kwargs else 2)
    step_vmem = rt * 128 * 4 + ps * E * itemsize + rt * E * itemsize
    body_vmem = rt * V * 4 + 2 * rt * E * 4
    vmem_limit = int(max(32 * 1024 * 1024,
                         tok_vmem + 2 * step_vmem + body_vmem + 4 * 1024 * 1024))

    # Megacore: only parallelize the row grid when per-row traffic dominates the
    # (per-TensorCore duplicated) resident-table DMA.  Inert on v5e/v6e (1 TC).
    semantics = ("parallel",) if rows * E * itemsize > 2 * table_bytes else ("arbitrary",)

    out_flat = pl.pallas_call(
        kernel,
        out_shape=jax.ShapeDtypeStruct((rows, E), dtype),
        grid=(num_tiles,),
        in_specs=[
            pl.BlockSpec((rt, 1), lambda i: (i, 0)),      # per-tile token ids (VMEM)
            tok_spec,                                     # full (V, E) table, resident
            pl.BlockSpec((ps, E), pos_index),             # positional rows (no wrapper slice)
        ],
        out_specs=pl.BlockSpec((rt, E), lambda i: (i, 0)),  # lane-dense output tile
        compiler_params=pltpu.CompilerParams(
            dimension_semantics=semantics,
            vmem_limit_bytes=vmem_limit),
        cost_estimate=pl.CostEstimate(
            flops=2 * rows * V * E + rows * E,
            transcendentals=0,
            bytes_accessed=(rows * E + T * E + V * E) * itemsize + rows * 4),
    )(idx_col, token_table, position_table)

    return out_flat.reshape(B, T, E)


if __name__ == "__main__":
    # Small shapes consistent with the GPT embedding front-end.
    B, T, E = 2, 8, 128      # batch, sequence, embed (lane-dense 128)
    V, P = 32, 16            # vocab size, max context length (block_size)

    key = jax.random.PRNGKey(0)
    k_tok, k_pos, k_idx = jax.random.split(key, 3)
    token_table = jax.random.normal(k_tok, (V, E), jnp.float32)
    position_table = jax.random.normal(k_pos, (P, E), jnp.float32)
    idx = jax.random.randint(k_idx, (B, T), 0, V, dtype=jnp.int32)

    y = combined_input(idx, token_table, position_table)
    jax.block_until_ready(y)

    # Reference: plain-JAX equivalent of the PyTorch forward.
    y_ref = token_table[idx] + position_table[jnp.arange(T)][None, :, :]
    assert y.shape == (B, T, E)
    assert jnp.allclose(y, y_ref, atol=1e-6, rtol=1e-6)

    print("KERNEL_OK")
</pallas_src>

<mosaic_0001>
module attributes {stable_mosaic.version = 11 : i64} {
  func.func @kernel(%arg0: i32, %arg1: memref<16x1xi32, #tpu.memory_space<vmem>>, %arg2: memref<32x128xf32, #tpu.memory_space<vmem>>, %arg3: memref<8x128xf32, #tpu.memory_space<vmem>>, %arg4: memref<16x128xf32, #tpu.memory_space<vmem>>) attributes {dimension_semantics = [#tpu.dimension_semantics<arbitrary>], iteration_bounds = array<i64: 1>, scalar_prefetch = 0 : i64, scratch_operands = 0 : i64, tpu.core_type = #tpu.core_type<tc>, window_params = [{transform_indices = @transform_0, window_bounds = array<i64: 16, 1>}, {pipeline_mode = #tpu.pipeline_mode<synchronous>, transform_indices = @transform_1, window_bounds = array<i64: 32, 128>}, {transform_indices = @transform_2, window_bounds = array<i64: 8, 128>}, {transform_indices = @transform_3, window_bounds = array<i64: 16, 128>}]} {
    %c0 = arith.constant 0 : index
    %c0_0 = arith.constant 0 : index
    %0 = vector.load %arg1[%c0, %c0_0] : memref<16x1xi32, #tpu.memory_space<vmem>>, vector<16x1xi32>
    %1 = tpu.iota {dimensions = array<i32: 1>} : vector<16x32xi32>
    %2 = vector.broadcast %0 : vector<16x1xi32> to vector<16x32xi32>
    %3 = arith.cmpi eq, %2, %1 : vector<16x32xi32>
    %4 = arith.extui %3 : vector<16x32xi1> to vector<16x32xi32>
    %5 = arith.sitofp %4 : vector<16x32xi32> to vector<16x32xf32>
    %c0_1 = arith.constant 0 : index
    %c0_2 = arith.constant 0 : index
    %6 = vector.load %arg2[%c0_1, %c0_2] : memref<32x128xf32, #tpu.memory_space<vmem>>, vector<32x128xf32>
    %cst = arith.constant dense<0.000000e+00> : vector<16x128xf32>
    %7 = tpu.matmul %5, %6, %cst {dimension_numbers = #tpu.dot_dimension_numbers<[1], [0], [0], [1], [0, 0, 1, 1], [], []>} : vector<16x32xf32>, vector<32x128xf32>, vector<16x128xf32> -> vector<16x128xf32>
    %c0_3 = arith.constant 0 : index
    %c0_4 = arith.constant 0 : index
    %8 = vector.load %arg3[%c0_3, %c0_4] : memref<8x128xf32, #tpu.memory_space<vmem>>, vector<8x128xf32>
    %9 = vector.shape_cast %8 : vector<8x128xf32> to vector<1x8x128xf32>
    %10 = vector.shape_cast %9 : vector<1x8x128xf32> to vector<1x8x128xf32>
    %11 = vector.broadcast %10 : vector<1x8x128xf32> to vector<2x8x128xf32>
    %12 = vector.shape_cast %11 : vector<2x8x128xf32> to vector<16x128xf32>
    %13 = arith.addf %7, %12 : vector<16x128xf32>
    %c0_5 = arith.constant 0 : index
    %c0_6 = arith.constant 0 : index
    %14 = vector.load %arg4[%c0_5, %c0_6] : memref<16x128xf32, #tpu.memory_space<vmem>>, vector<16x128xf32>
    tpu.vector_store %arg4[%c0_5, %c0_6], %13 {strides = array<i32>} : memref<16x128xf32, #tpu.memory_space<vmem>>, vector<16x128xf32>,
    return
  }
  func.func @transform_0(%arg0: i32) -> (i32, i32) {
    %c0_i32 = arith.constant 0 : i32
    %c0_i32_0 = arith.constant 0 : i32
    return %arg0, %c0_i32 : i32, i32
  }
  func.func @transform_1(%arg0: i32) -> (i32, i32) {
    %c0_i32 = arith.constant 0 : i32
    %c0_i32_0 = arith.constant 0 : i32
    %c0_i32_1 = arith.constant 0 : i32
    return %c0_i32, %c0_i32_0 : i32, i32
  }
  func.func @transform_2(%arg0: i32) -> (i32, i32) {
    %c0_i32 = arith.constant 0 : i32
    %c0_i32_0 = arith.constant 0 : i32
    %c0_i32_1 = arith.constant 0 : i32
    return %c0_i32, %c0_i32_0 : i32, i32
  }
  func.func @transform_3(%arg0: i32) -> (i32, i32) {
    %c0_i32 = arith.constant 0 : i32
    %c0_i32_0 = arith.constant 0 : i32
    return %arg0, %c0_i32 : i32, i32
  }
}

</mosaic_0001>

<bundles_post_ra>
// kernel: tpu_custom_call.1
= control target key start
LH: loop header
LB: loop body
LE: loop exit
PB: predicated region body
PF: predicated region fallthrough
CT: control target
= control target key end

     0   :  { %8 = vsyncpa [#allocation3], 0  ;;  %s270_s0 = inlined_call_operand.vmem [shape: s32[16,1], index: 0, kind: input, shape index: {}]   ;;  %s271_s1 = inlined_call_operand.hbm [shape: f32[32,128], index: 1, kind: input, shape index: {}]   ;;  %s272_s2 = inlined_call_operand.vmem [shape: f32[16,128], index: 2, kind: input, shape index: {}]   ;;  %s273_s3 = inlined_call_operand.hbm [shape: f32[16,128], index: 3, kind: output, shape index: {}]  }
   0x1   :  { %9 = vsyncpa [#allocation4], 0  ;;  %s223_s12 = smov [#allocation2]  }
   0x2   :  { %s17_s13 = sshll.u32 %s223_s12, 4  ;;  %s18_s13 = int_to_ptr.vmem [resolvable:$true] %s17_s13 }
   0x3   :  { %s187_s14 = scalar_lea.vmem %s18_s13, 512  ;;  %p192_p1 = scmp.lt.s32.totalorder %s18_s13, %s18_s13 }
   0x4   :  { %p188_p0 = scmp.ne.s32.totalorder %s18_s13, %s187_s14  ;;  %p193_p2 = scmp.lt.s32.totalorder %s187_s14, %s187_s14 }
   0x6   :  { %p194_p3 = por %p193_p2, %p192_p1 }
   0x8   :  { %p195_p4 = pnand %p194_p3, %p188_p0 }
   0xa   :  { %198 = shalt.err (!%p195_p4)
}
   0xb   :  { %s224_s15 = smov 128   ;;  %s225_s16 = smov 8  }
   0xc   :  { %23 = dma.hbm_to_vmem [thread:$0]  %s271_s1, 512, %s18_s13, [#allocation3], %s224_s15, %s224_s15, %s225_s16  }
   0xd   :  { %219 = dma.done.wait [#allocation3], 512  }
   0xe   :  { %220 = vsyncadd [#allocation3], 4294966784  ;;  %v226_v0 = vmov 0   ;;  %v29_v1 = vld [vmem:[%s270_s0] sm:$0xff]  ;;  %v48_v2 = vld [vmem:[#allocation2 + $0x18] sm:$0xff]  ;;  %v31_v7 = vlaneseq  ;;  %vm50_vm0 = vcmask 261120  }
   0xf   :  { %178 = vset.pattern.permute.xlu0 %v226_v0  ;;  %161 = vmatprep.subr.mxu0 %v48_v2  ;;  %v47_v3 = vld [vmem:[#allocation2 + $0x10] sm:$0xff]  ;;  %v30_v4 = vld [vmem:[%s270_s0 + $0x8] sm:$0xff]  ;;  %v46_v5 = vld [vmem:[#allocation2 + $0x8] sm:$0xff]  ;;  %v227_v10 = vmov 0.0   ;;  %s228_s23 = smov [#allocation5]  }
  0x10   :  { %34 = vperm.xlu0 %178, %v29_v1   ;;  %162 = vmatpush3.msra.mxu0 %v48_v2  ;;  %v45_v6 = vld [vmem:[#allocation2] sm:$0xff]  ;;  %v32_v8 = vand.u32 127, %v31_v7  ;;  %v49_v14 = vld [vmem:[%s272_s2] sm:$0xff]  ;;  %s139_s24 = sshll.u32 %s228_s23, 4  ;;  %s140_s24 = int_to_ptr.vmem [resolvable:$true] %s139_s24 }
  0x11   :  { %163 = vmatprep.subr.mxu0 %v47_v3  ;;  %s199_s25 = scalar_lea.vmem %s140_s24, 256  ;;  %p204_p6 = scmp.lt.s32.totalorder %s140_s24, %s140_s24 }
  0x12   :  { %164 = vmatpush3.msra.mxu0 %v47_v3  ;;  %p200_p5 = scmp.ne.s32.totalorder %s140_s24, %s199_s25  ;;  %p205_p7 = scmp.lt.s32.totalorder %s199_s25, %s199_s25 }
  0x13   :  { %165 = vmatprep.subr.mxu0 %v46_v5 }
  0x14   :  { %37 = vperm.xlu0 %178, %v30_v4   ;;  %166 = vmatpush3.msra.mxu0 %v46_v5  ;;  %p206_p8 = por %p205_p7, %p204_p6 }
  0x15   :  { %167 = vmatprep.subr.mxu0 %v45_v6 }
  0x16   :  { %168 = vmatpush3.msra.mxu0 %v45_v6  ;;  %p207_p9 = pnand %p206_p8, %p200_p5 }
  0x8b   :  { %v35_v9 = vpop.permute.xlu0 %34 }
  0x8c   :  { %vm39_vm1 = vcmp.eq.s32.totalorder %v35_v9, %v32_v8 }
  0x8d   :  { %v151_v11 = vsel %vm39_vm1, 1.0, %v227_v10 }
  0x8e   :  { %169 = vmatprep.mubr.msk.f32.mxu0 %vm50_vm0, %v151_v11 }
  0x8f   :  { %v38_v12 = vpop.permute.xlu0 %37 }
  0x90   :  { %vm40_vm2 = vcmp.eq.s32.totalorder %v38_v12, %v32_v8 }
  0x91   :  { %v152_v13 = vsel %vm40_vm2, 1.0, %v227_v10 }
  0x92   :  { %170 = vmatmul.mubr.msk.f32.vlgmr.msra.gmra.mxu0 %vm50_vm0, %v152_v13 }
 0x152   :  { %v171_v15 = vpop.f32.mrf.mxu0 }
 0x153   :  { %v129_v16 = vadd.f32 %v171_v15, %v49_v14 }
 0x154   :  { %v123_v17 = vpop.f32.mrf.mxu0 }
 0x155   :  { %133 = vst [vmem:[#allocation5 + $0x8] sm:$0xff] %v129_v16  ;;  %v124_v18 = vadd.f32 %v123_v17, %v49_v14 }
 0x157   :  { %132 = vst [vmem:[#allocation5] sm:$0xff] %v124_v18 }
 0x158   :  { %210 = shalt.err (!%p207_p9)
}
 0x159   :  { %145 = dma.vmem_to_hbm [thread:$0]  %s140_s24, 256, %s273_s3, [#allocation4], %s224_s15, %s224_s15, %s225_s16  }
 0x15a   :  { %221 = dma.done.wait [#allocation4], 256  }
 0x15b   :  { %222 = vsyncadd [#allocation4], 4294967040 }
 0x15c   :  { %149 = vsyncpa [#allocation3], 1 }
 0x15d   :  { %150 = vsyncpa [#allocation4], 1 }

</bundles_post_ra>
